<compile_context>
chip_gen: v7x
topology: tpu7x:2x2x1
jax: 0.10.0
libtpu: 0.0.40
codegen_flags: <defaults>
</compile_context>

<pallas_src>
import jax
import jax.numpy as jnp
from jax.experimental import pallas as pl
from jax.experimental.pallas import tpu as pltpu


# ----------------------------- fused Pallas kernel ---------------------------

def _graph_gen_kernel(x_ref, w1_ref, b1_ref, w2_ref, b2_ref, w3_ref, b3_ref,
                      ahat_ref, wg1_ref, bg1_ref, wg2_ref, bg2_ref, o_ref):
    f32 = jnp.float32

    # ----- MLP: linear1 -> relu -> linear2 -> relu -> linear3 -> relu --------
    h = jnp.dot(x_ref[...], w1_ref[...], preferred_element_type=f32) + b1_ref[...]
    h = jnp.maximum(h, 0.0)
    h = jnp.dot(h, w2_ref[...], preferred_element_type=f32) + b2_ref[...]
    h = jnp.maximum(h, 0.0)
    h3 = jnp.dot(h, w3_ref[...], preferred_element_type=f32) + b3_ref[...]
    h3 = jnp.maximum(h3, 0.0)                       # [1, 4N], feature-major cols

    # h3[0, f*N + n] == Xn[n, f]  (w3/b3 columns were pre-permuted), so each row
    # of Xn^T is a contiguous lane slice -- no cross-lane transpose needed.
    n = ahat_ref.shape[0]
    xT = [h3[:, f * n:(f + 1) * n] for f in range(4)]    # 4 x [1, N], N on lanes

    # ----- GCN layer 1 (transposed): H1^T = relu(Wg1^T Xn^T Ahat + bg1) ------
    # K=4 feature contraction as VPU scalar(SMEM)-broadcast FMA; keep the MXU
    # for the big lane-dense Ahat product.
    z1_rows = []
    for c in range(2):
        acc = wg1_ref[0, c] * xT[0]
        for f in range(1, 4):
            acc = acc + wg1_ref[f, c] * xT[f]
        z1_rows.append(acc)
    z1 = jnp.concatenate(z1_rows, axis=0)                          # [2, N]
    m1 = jnp.dot(z1, ahat_ref[...], preferred_element_type=f32)    # [2, N] (Ahat sym.)
    h1_0 = jnp.maximum(m1[0:1, :] + bg1_ref[0], 0.0)               # [1, N]
    h1_1 = jnp.maximum(m1[1:2, :] + bg1_ref[1], 0.0)               # [1, N]

    # ----- GCN layer 2 (transposed): out = sigmoid(Wg2^T H1^T Ahat + bg2) ----
    z2 = wg2_ref[0, 0] * h1_0 + wg2_ref[1, 0] * h1_1               # [1, N]
    m2 = jnp.dot(z2, ahat_ref[...], preferred_element_type=f32)    # [1, N]
    o_ref[...] = jax.nn.sigmoid(m2 + bg2_ref[0])                   # lane-dense [1, N]


# ------------------------------- wrapper --------------------------------------

_VMEM = pl.BlockSpec(memory_space=pltpu.MemorySpace.VMEM)
_SMEM = pl.BlockSpec(memory_space=pltpu.MemorySpace.SMEM)


def graph_generator_forward(x, params, ahat):
    """Full graphGenerator.forward.  x: [1, input_size] -> out: [num_nodes]."""
    n = ahat.shape[0]
    hidden = params["w3"].shape[0]

    # Pre-permute linear3's output columns to feature-major order so the kernel
    # sees Xn^T directly (pure parameter preprocessing; could be hoisted to init).
    w3_fm = params["w3"].reshape(hidden, n, 4).transpose(0, 2, 1).reshape(hidden, 4 * n)
    b3_fm = params["b3"].reshape(1, n, 4).transpose(0, 2, 1).reshape(1, 4 * n)

    in_size = x.shape[1]
    flops = 2 * (in_size * 256 + 256 * 512 + 512 * 4 * n)       # MLP
    flops += 2 * n * 4 * 2 + 2 * 2 * n * n                       # GCN layer 1
    flops += 2 * n * 2 * 1 + 2 * 1 * n * n                       # GCN layer 2
    bytes_accessed = 4 * (x.size + params["w1"].size + params["b1"].size
                          + params["w2"].size + params["b2"].size
                          + w3_fm.size + b3_fm.size + ahat.size
                          + params["wg1"].size + params["bg1"].size
                          + params["wg2"].size + params["bg2"].size + n)

    out = pl.pallas_call(
        _graph_gen_kernel,
        out_shape=jax.ShapeDtypeStruct((1, n), jnp.float32),
        in_specs=[_VMEM] * 8 + [_SMEM] * 4,
        out_specs=_VMEM,
        cost_estimate=pl.CostEstimate(
            flops=int(flops), transcendentals=int(n),
            bytes_accessed=int(bytes_accessed)),
    )(x, params["w1"], params["b1"], params["w2"], params["b2"], w3_fm, b3_fm,
      ahat, params["wg1"], params["bg1"], params["wg2"], params["bg2"])
    return jnp.reshape(out, (-1,))


# ------------------------ pure-JAX reference (torch semantics) ----------------

def reference_forward(x, params, ahat):
    h = jnp.maximum(x @ params["w1"] + params["b1"], 0.0)
    h = jnp.maximum(h @ params["w2"] + params["b2"], 0.0)
    h = jnp.maximum(h @ params["w3"] + params["b3"], 0.0)
    n = ahat.shape[0]
    xn = h.reshape(n, 4)                                         # x.view(len(graph.x), 4)
    h1 = jnp.maximum(ahat @ (xn @ params["wg1"]) + params["bg1"], 0.0)
    h2 = ahat @ (h1 @ params["wg2"]) + params["bg2"]
    return jax.nn.sigmoid(h2).reshape(-1)


# ------------------------- graph / parameter setup ----------------------------

def build_normalized_adjacency(num_nodes, edge_index):
    """Dense Ahat = D^-1/2 (A + I) D^-1/2 from an edge_index [2, E] (src, dst)."""
    a = jnp.zeros((num_nodes, num_nodes), jnp.float32)
    a = a.at[edge_index[0], edge_index[1]].set(1.0)
    a = a + jnp.eye(num_nodes, dtype=jnp.float32)                # add self loops
    deg = jnp.sum(a, axis=1)
    d_inv_sqrt = jnp.where(deg > 0, 1.0 / jnp.sqrt(deg), 0.0)
    return d_inv_sqrt[:, None] * a * d_inv_sqrt[None, :]


def init_params(key, input_size, num_nodes):
    ks = jax.random.split(key, 6)
    scale = 0.05
    return {
        "w1": scale * jax.random.normal(ks[0], (input_size, 256), jnp.float32),
        "b1": jnp.zeros((1, 256), jnp.float32),
        "w2": scale * jax.random.normal(ks[1], (256, 512), jnp.float32),
        "b2": jnp.zeros((1, 512), jnp.float32),
        "w3": scale * jax.random.normal(ks[2], (512, num_nodes * 4), jnp.float32),
        "b3": 0.01 * jnp.ones((1, num_nodes * 4), jnp.float32),
        "wg1": scale * jax.random.normal(ks[3], (4, 2), jnp.float32),
        "bg1": 0.01 * jnp.ones((2,), jnp.float32),
        "wg2": scale * jax.random.normal(ks[4], (2, 1), jnp.float32),
        "bg2": 0.01 * jnp.ones((1,), jnp.float32),
    }


if __name__ == "__main__":
    key = jax.random.PRNGKey(0)
    k_x, k_p = jax.random.split(key)

    input_size = 32
    num_nodes = 8          # len(graph.x)

    # Small undirected ring graph, edge_index like torch_geometric's [2, E].
    src = jnp.arange(num_nodes, dtype=jnp.int32)
    dst = (src + 1) % num_nodes
    edge_index = jnp.stack([jnp.concatenate([src, dst]),
                            jnp.concatenate([dst, src])], axis=0)

    ahat = build_normalized_adjacency(num_nodes, edge_index)
    params = init_params(k_p, input_size, num_nodes)

    x = jax.random.normal(k_x, (1, input_size), jnp.float32)

    out = graph_generator_forward(x, params, ahat)
    jax.block_until_ready(out)

    ref = reference_forward(x, params, ahat)
    jax.block_until_ready(ref)

    assert out.shape == (num_nodes,)
    assert bool(jnp.all(jnp.isfinite(out)))
    assert bool(jnp.all((out >= 0.0) & (out <= 1.0)))            # sigmoid output
    assert bool(jnp.allclose(out, ref, atol=2e-2, rtol=2e-2)), (out, ref)
    print("KERNEL_OK")
</pallas_src>

<mosaic_0001>
module attributes {stable_mosaic.version = 11 : i64} {
  func.func @_graph_gen_kernel(%arg0: memref<1x32xf32, #tpu.memory_space<vmem>>, %arg1: memref<32x256xf32, #tpu.memory_space<vmem>>, %arg2: memref<1x256xf32, #tpu.memory_space<vmem>>, %arg3: memref<256x512xf32, #tpu.memory_space<vmem>>, %arg4: memref<1x512xf32, #tpu.memory_space<vmem>>, %arg5: memref<512x32xf32, #tpu.memory_space<vmem>>, %arg6: memref<1x32xf32, #tpu.memory_space<vmem>>, %arg7: memref<8x8xf32, #tpu.memory_space<vmem>>, %arg8: memref<4x2xf32, #tpu.memory_space<smem>>, %arg9: memref<2xf32, #tpu.memory_space<smem>>, %arg10: memref<2x1xf32, #tpu.memory_space<smem>>, %arg11: memref<1xf32, #tpu.memory_space<smem>>, %arg12: memref<1x8xf32, #tpu.memory_space<vmem>>) attributes {dimension_semantics = [], scalar_prefetch = 0 : i64, scratch_operands = 0 : i64, tpu.core_type = #tpu.core_type<tc>} {
    %c0 = arith.constant 0 : index
    %c0_0 = arith.constant 0 : index
    %0 = vector.load %arg0[%c0, %c0_0] : memref<1x32xf32, #tpu.memory_space<vmem>>, vector<1x32xf32>
    %c0_1 = arith.constant 0 : index
    %c0_2 = arith.constant 0 : index
    %1 = vector.load %arg1[%c0_1, %c0_2] : memref<32x256xf32, #tpu.memory_space<vmem>>, vector<32x256xf32>
    %cst = arith.constant dense<0.000000e+00> : vector<1x256xf32>
    %2 = tpu.matmul %0, %1, %cst {dimension_numbers = #tpu.dot_dimension_numbers<[1], [0], [0], [1], [0, 0, 1, 1], [], []>} : vector<1x32xf32>, vector<32x256xf32>, vector<1x256xf32> -> vector<1x256xf32>
    %c0_3 = arith.constant 0 : index
    %c0_4 = arith.constant 0 : index
    %3 = vector.load %arg2[%c0_3, %c0_4] : memref<1x256xf32, #tpu.memory_space<vmem>>, vector<1x256xf32>
    %4 = arith.addf %2, %3 : vector<1x256xf32>
    %cst_5 = arith.constant 0.000000e+00 : f32
    %5 = vector.broadcast %cst_5 : f32 to vector<1x256xf32>
    %6 = arith.maximumf %4, %5 : vector<1x256xf32>
    %c0_6 = arith.constant 0 : index
    %c0_7 = arith.constant 0 : index
    %7 = vector.load %arg3[%c0_6, %c0_7] : memref<256x512xf32, #tpu.memory_space<vmem>>, vector<256x512xf32>
    %cst_8 = arith.constant dense<0.000000e+00> : vector<1x512xf32>
    %8 = tpu.matmul %6, %7, %cst_8 {dimension_numbers = #tpu.dot_dimension_numbers<[1], [0], [0], [1], [0, 0, 1, 1], [], []>} : vector<1x256xf32>, vector<256x512xf32>, vector<1x512xf32> -> vector<1x512xf32>
    %c0_9 = arith.constant 0 : index
    %c0_10 = arith.constant 0 : index
    %9 = vector.load %arg4[%c0_9, %c0_10] : memref<1x512xf32, #tpu.memory_space<vmem>>, vector<1x512xf32>
    %10 = arith.addf %8, %9 : vector<1x512xf32>
    %cst_11 = arith.constant 0.000000e+00 : f32
    %11 = vector.broadcast %cst_11 : f32 to vector<1x512xf32>
    %12 = arith.maximumf %10, %11 : vector<1x512xf32>
    %c0_12 = arith.constant 0 : index
    %c0_13 = arith.constant 0 : index
    %13 = vector.load %arg5[%c0_12, %c0_13] : memref<512x32xf32, #tpu.memory_space<vmem>>, vector<512x32xf32>
    %cst_14 = arith.constant dense<0.000000e+00> : vector<1x32xf32>
    %14 = tpu.matmul %12, %13, %cst_14 {dimension_numbers = #tpu.dot_dimension_numbers<[1], [0], [0], [1], [0, 0, 1, 1], [], []>} : vector<1x512xf32>, vector<512x32xf32>, vector<1x32xf32> -> vector<1x32xf32>
    %c0_15 = arith.constant 0 : index
    %c0_16 = arith.constant 0 : index
    %15 = vector.load %arg6[%c0_15, %c0_16] : memref<1x32xf32, #tpu.memory_space<vmem>>, vector<1x32xf32>
    %16 = arith.addf %14, %15 : vector<1x32xf32>
    %cst_17 = arith.constant 0.000000e+00 : f32
    %17 = vector.broadcast %cst_17 : f32 to vector<1x32xf32>
    %18 = arith.maximumf %16, %17 : vector<1x32xf32>
    %19 = vector.extract_strided_slice %18 {offsets = [0, 0], sizes = [1, 8], strides = [1, 1]} : vector<1x32xf32> to vector<1x8xf32>
    %20 = vector.extract_strided_slice %18 {offsets = [0, 8], sizes = [1, 8], strides = [1, 1]} : vector<1x32xf32> to vector<1x8xf32>
    %21 = vector.extract_strided_slice %18 {offsets = [0, 16], sizes = [1, 8], strides = [1, 1]} : vector<1x32xf32> to vector<1x8xf32>
    %22 = vector.extract_strided_slice %18 {offsets = [0, 24], sizes = [1, 8], strides = [1, 1]} : vector<1x32xf32> to vector<1x8xf32>
    %c0_18 = arith.constant 0 : index
    %c0_19 = arith.constant 0 : index
    %23 = memref.load %arg8[%c0_18, %c0_19] : memref<4x2xf32, #tpu.memory_space<smem>>
    %24 = vector.broadcast %23 : f32 to vector<1x8xf32>
    %25 = arith.mulf %24, %19 : vector<1x8xf32>
    %c1 = arith.constant 1 : index
    %c0_20 = arith.constant 0 : index
    %26 = memref.load %arg8[%c1, %c0_20] : memref<4x2xf32, #tpu.memory_space<smem>>
    %27 = vector.broadcast %26 : f32 to vector<1x8xf32>
    %28 = arith.mulf %27, %20 : vector<1x8xf32>
    %29 = arith.addf %25, %28 : vector<1x8xf32>
    %c2 = arith.constant 2 : index
    %c0_21 = arith.constant 0 : index
    %30 = memref.load %arg8[%c2, %c0_21] : memref<4x2xf32, #tpu.memory_space<smem>>
    %31 = vector.broadcast %30 : f32 to vector<1x8xf32>
    %32 = arith.mulf %31, %21 : vector<1x8xf32>
    %33 = arith.addf %29, %32 : vector<1x8xf32>
    %c3 = arith.constant 3 : index
    %c0_22 = arith.constant 0 : index
    %34 = memref.load %arg8[%c3, %c0_22] : memref<4x2xf32, #tpu.memory_space<smem>>
    %35 = vector.broadcast %34 : f32 to vector<1x8xf32>
    %36 = arith.mulf %35, %22 : vector<1x8xf32>
    %37 = arith.addf %33, %36 : vector<1x8xf32>
    %c0_23 = arith.constant 0 : index
    %c1_24 = arith.constant 1 : index
    %38 = memref.load %arg8[%c0_23, %c1_24] : memref<4x2xf32, #tpu.memory_space<smem>>
    %39 = vector.broadcast %38 : f32 to vector<1x8xf32>
    %40 = arith.mulf %39, %19 : vector<1x8xf32>
    %c1_25 = arith.constant 1 : index
    %c1_26 = arith.constant 1 : index
    %41 = memref.load %arg8[%c1_25, %c1_26] : memref<4x2xf32, #tpu.memory_space<smem>>
    %42 = vector.broadcast %41 : f32 to vector<1x8xf32>
    %43 = arith.mulf %42, %20 : vector<1x8xf32>
    %44 = arith.addf %40, %43 : vector<1x8xf32>
    %c2_27 = arith.constant 2 : index
    %c1_28 = arith.constant 1 : index
    %45 = memref.load %arg8[%c2_27, %c1_28] : memref<4x2xf32, #tpu.memory_space<smem>>
    %46 = vector.broadcast %45 : f32 to vector<1x8xf32>
    %47 = arith.mulf %46, %21 : vector<1x8xf32>
    %48 = arith.addf %44, %47 : vector<1x8xf32>
    %c3_29 = arith.constant 3 : index
    %c1_30 = arith.constant 1 : index
    %49 = memref.load %arg8[%c3_29, %c1_30] : memref<4x2xf32, #tpu.memory_space<smem>>
    %50 = vector.broadcast %49 : f32 to vector<1x8xf32>
    %51 = arith.mulf %50, %22 : vector<1x8xf32>
    %52 = arith.addf %48, %51 : vector<1x8xf32>
    %53 = tpu.concatenate %37, %52 in 0 : vector<1x8xf32>, vector<1x8xf32> -> vector<2x8xf32>
    %c0_31 = arith.constant 0 : index
    %c0_32 = arith.constant 0 : index
    %54 = vector.load %arg7[%c0_31, %c0_32] : memref<8x8xf32, #tpu.memory_space<vmem>>, vector<8x8xf32>
    %cst_33 = arith.constant dense<0.000000e+00> : vector<2x8xf32>
    %55 = tpu.matmul %53, %54, %cst_33 {dimension_numbers = #tpu.dot_dimension_numbers<[1], [0], [0], [1], [0, 0, 1, 1], [], []>} : vector<2x8xf32>, vector<8x8xf32>, vector<2x8xf32> -> vector<2x8xf32>
    %56 = vector.extract_strided_slice %55 {offsets = [0, 0], sizes = [1, 8], strides = [1, 1]} : vector<2x8xf32> to vector<1x8xf32>
    %c0_34 = arith.constant 0 : index
    %57 = memref.load %arg9[%c0_34] : memref<2xf32, #tpu.memory_space<smem>>
    %58 = vector.broadcast %57 : f32 to vector<1x8xf32>
    %59 = arith.addf %56, %58 : vector<1x8xf32>
    %cst_35 = arith.constant 0.000000e+00 : f32
    %60 = vector.broadcast %cst_35 : f32 to vector<1x8xf32>
    %61 = arith.maximumf %59, %60 : vector<1x8xf32>
    %62 = vector.extract_strided_slice %55 {offsets = [1, 0], sizes = [1, 8], strides = [1, 1]} : vector<2x8xf32> to vector<1x8xf32>
    %c1_36 = arith.constant 1 : index
    %63 = memref.load %arg9[%c1_36] : memref<2xf32, #tpu.memory_space<smem>>
    %64 = vector.broadcast %63 : f32 to vector<1x8xf32>
    %65 = arith.addf %62, %64 : vector<1x8xf32>
    %cst_37 = arith.constant 0.000000e+00 : f32
    %66 = vector.broadcast %cst_37 : f32 to vector<1x8xf32>
    %67 = arith.maximumf %65, %66 : vector<1x8xf32>
    %c0_38 = arith.constant 0 : index
    %c0_39 = arith.constant 0 : index
    %68 = memref.load %arg10[%c0_38, %c0_39] : memref<2x1xf32, #tpu.memory_space<smem>>
    %69 = vector.broadcast %68 : f32 to vector<1x8xf32>
    %70 = arith.mulf %69, %61 : vector<1x8xf32>
    %c1_40 = arith.constant 1 : index
    %c0_41 = arith.constant 0 : index
    %71 = memref.load %arg10[%c1_40, %c0_41] : memref<2x1xf32, #tpu.memory_space<smem>>
    %72 = vector.broadcast %71 : f32 to vector<1x8xf32>
    %73 = arith.mulf %72, %67 : vector<1x8xf32>
    %74 = arith.addf %70, %73 : vector<1x8xf32>
    %c0_42 = arith.constant 0 : index
    %c0_43 = arith.constant 0 : index
    %75 = vector.load %arg7[%c0_42, %c0_43] : memref<8x8xf32, #tpu.memory_space<vmem>>, vector<8x8xf32>
    %cst_44 = arith.constant dense<0.000000e+00> : vector<1x8xf32>
    %76 = tpu.matmul %74, %75, %cst_44 {dimension_numbers = #tpu.dot_dimension_numbers<[1], [0], [0], [1], [0, 0, 1, 1], [], []>} : vector<1x8xf32>, vector<8x8xf32>, vector<1x8xf32> -> vector<1x8xf32>
    %c0_45 = arith.constant 0 : index
    %77 = memref.load %arg11[%c0_45] : memref<1xf32, #tpu.memory_space<smem>>
    %78 = vector.broadcast %77 : f32 to vector<1x8xf32>
    %79 = arith.addf %76, %78 : vector<1x8xf32>
    %80 = arith.negf %79 : vector<1x8xf32>
    %81 = math.exp %80 : vector<1x8xf32>
    %cst_46 = arith.constant 1.000000e+00 : f32
    %82 = vector.broadcast %cst_46 : f32 to vector<1x8xf32>
    %83 = arith.addf %82, %81 : vector<1x8xf32>
    %84 = arith.divf %82, %83 : vector<1x8xf32>
    %c0_47 = arith.constant 0 : index
    %c0_48 = arith.constant 0 : index
    %85 = vector.load %arg12[%c0_47, %c0_48] : memref<1x8xf32, #tpu.memory_space<vmem>>, vector<1x8xf32>
    tpu.vector_store %arg12[%c0_47, %c0_48], %84 {strides = array<i32>} : memref<1x8xf32, #tpu.memory_space<vmem>>, vector<1x8xf32>,
    return
  }
}

</mosaic_0001>

<bundles_post_ra>
// kernel: tpu_custom_call.1
= control target key start
LH: loop header
LB: loop body
LE: loop exit
PB: predicated region body
PF: predicated region fallthrough
CT: control target
= control target key end

     0   :  { %18 = vsyncpa [#allocation4], 0  ;;  %s1713_s0 = inlined_call_operand.vmem [shape: f32[1,32], index: 0, kind: input, shape index: {}]   ;;  %s1714_s1 = inlined_call_operand.vmem [shape: f32[32,256], index: 1, kind: input, shape index: {}]   ;;  %s1715_s2 = inlined_call_operand.vmem [shape: f32[1,256], index: 2, kind: input, shape index: {}]   ;;  %s1716_s3 = inlined_call_operand.hbm [shape: f32[256,512], index: 3, kind: input, shape index: {}]   ;;  %s1717_s4 = inlined_call_operand.vmem [shape: f32[1,512], index: 4, kind: input, shape index: {}]   ;;  %s1718_s5 = inlined_call_operand.vmem [shape: f32[512,32], index: 5, kind: input, shape index: {}]   ;;  %s1719_s6 = inlined_call_operand.vmem [shape: f32[1,32], index: 6, kind: input, shape index: {}]   ;;  %s1720_s7 = inlined_call_operand.vmem [shape: f32[8,8], index: 7, kind: input, shape index: {}]   ;;  %s1721_s8 = inlined_call_operand.vmem [shape: f32[4,2], index: 8, kind: input, shape index: {}]   ;;  %s1722_s9 = inlined_call_operand.vmem [shape: f32[2], index: 9, kind: input, shape index: {}]   ;;  %s1723_s10 = inlined_call_operand.vmem [shape: f32[2,1], index: 10, kind: input, shape index: {}]   ;;  %s1724_s11 = inlined_call_operand.<no memory space> [shape: f32[1], index: 11, kind: input, shape index: {}]   ;;  %s1725_s12 = inlined_call_operand.hbm [shape: f32[1,8], index: 12, kind: output, shape index: {}]  }
   0x1   :  { %19 = vsyncpa [#allocation6], 0 }
   0x2   :  { %20 = vsyncpa [#allocation9], 0  ;;  %s64_s23 = sshll.u32 %s1722_s9, 4  ;;  %s65_s23 = int_to_ptr.vmem [resolvable:$true] %s64_s23 }
   0x3   :  { %21 = vsyncpa [#allocation5], 0  ;;  %s1258_s24 = scalar_lea.vmem %s65_s23, 16  ;;  %p1263_p1 = scmp.lt.s32.totalorder %s65_s23, %s65_s23 }
   0x4   :  { %p1259_p0 = scmp.ne.s32.totalorder %s65_s23, %s1258_s24  ;;  %p1264_p2 = scmp.lt.s32.totalorder %s1258_s24, %s1258_s24 }
   0x6   :  { %p1265_p3 = por %p1264_p2, %p1263_p1 }
   0x8   :  { %p1266_p4 = pnand %p1265_p3, %p1259_p0 }
   0xa   :  { %1269 = shalt.err (!%p1266_p4)
}
   0xb   :  { %s1346_s25 = smov [#allocation8]   ;;  %s1347_s26 = smov [#allocation3]  }
   0xc   :  { %67 = dma.vmem_to_smem %s65_s23, 16, %s1346_s25, [#allocation9]  }
   0xd   :  { %s33_s27 = sshll.u32 %s1347_s26, 4  ;;  %s1270_s30 = scalar_lea.hbm %s1716_s3, 16384  ;;  %s34_s27 = int_to_ptr.vmem [resolvable:$true] %s33_s27 }
   0xe   :  { %p1271_p5 = scmp.ne.s32.totalorder %s1716_s3, %s1270_s30  ;;  %p1274_p6 = scmp.lt.u32.totalorder %s1270_s30, %s1716_s3 }
  0x10   :  { %p1276_p7 = pnand %p1274_p6, %p1271_p5 }
  0x12   :  { %1279 = shalt.err (!%p1276_p7)
}
  0x13   :  { %s1280_s16 = scalar_lea.vmem %s34_s27, 16384  ;;  %p1285_p9 = scmp.lt.s32.totalorder %s34_s27, %s34_s27 }
  0x14   :  { %p1281_p8 = scmp.ne.s32.totalorder %s34_s27, %s1280_s16  ;;  %p1286_p10 = scmp.lt.s32.totalorder %s1280_s16, %s1280_s16 }
  0x16   :  { %p1287_p11 = por %p1286_p10, %p1285_p9 }
  0x18   :  { %p1288_p12 = pnand %p1287_p11, %p1281_p8 }
  0x1a   :  { %1291 = shalt.err (!%p1288_p12)
}
  0x1b   :  { %s1348_s17 = smov 512   ;;  %s1349_s18 = smov 32  }
  0x1c   :  { %39 = dma.hbm_to_vmem [thread:$0]  %s1716_s3, 16384, %s34_s27, [#allocation4], %s1348_s17, %s1348_s17, %s1349_s18  }
  0x1d   :  { %s54_s23 = sshll.u32 %s1721_s8, 4  ;;  %s74_s26 = sshll.u32 %s1723_s10, 4  ;;  %s55_s23 = int_to_ptr.vmem [resolvable:$true] %s54_s23  ;;  %s75_s26 = int_to_ptr.vmem [resolvable:$true] %s74_s26 }
  0x1e   :  { %s1292_s28 = scalar_lea.vmem %s55_s23, 64  ;;  %p1297_p0 = scmp.lt.s32.totalorder %s55_s23, %s55_s23 }
  0x1f   :  { %p1293_p13 = scmp.ne.s32.totalorder %s55_s23, %s1292_s28  ;;  %p1298_p1 = scmp.lt.s32.totalorder %s1292_s28, %s1292_s28 }
  0x21   :  { %p1299_p2 = por %p1298_p1, %p1297_p0 }
  0x23   :  { %p1300_p3 = pnand %p1299_p2, %p1293_p13 }
  0x25   :  { %1303 = shalt.err (!%p1300_p3)
}
  0x26   :  { %s1350_s29 = smov [#allocation7]   ;;  %s1304_s3 = scalar_lea.vmem %s75_s26, 32 }
  0x27   :  { %57 = dma.vmem_to_smem %s55_s23, 64, %s1350_s29, [#allocation6]  }
  0x28   :  { %p1305_p4 = scmp.ne.s32.totalorder %s75_s26, %s1304_s3  ;;  %p1309_p5 = scmp.lt.s32.totalorder %s75_s26, %s75_s26 }
  0x29   :  { %p1310_p6 = scmp.lt.s32.totalorder %s1304_s3, %s1304_s3 }
  0x2b   :  { %p1311_p7 = por %p1310_p6, %p1309_p5 }
  0x2d   :  { %p1312_p8 = pnand %p1311_p7, %p1305_p4 }
  0x2f   :  { %1315 = shalt.err (!%p1312_p8)
}
  0x30   :  { %s1351_s8 = smov [#allocation10]  }
  0x31   :  { %77 = dma.vmem_to_smem %s75_s26, 32, %s1351_s8, [#allocation9]  }
  0x32   :  { %1338 = dma.done.wait [#allocation4], 16384  }
  0x33   :  { %1339 = vsyncadd [#allocation4], 4294950912 }
  0x34   :  { %1340 = dma.done.wait [#allocation6], 64  }
  0x35   :  { %1341 = vsyncadd [#allocation6], 4294967232 }
  0x36   :  { %1342 = dma.done.wait [#allocation9], 48  }
  0x37   :  { %1343 = vsyncadd [#allocation9], 4294967248 }
  0x38   :  { %92 = sfence }
  0x39   :  { %v95_v0 = vld [vmem:[%s1714_s1 + $0x8] sm:$0xff]  ;;  %v97_v1 = vld [vmem:[%s1714_s1 + $0x18] sm:$0xff]  ;;  %v94_v2 = vld [vmem:[%s1714_s1] sm:$0xff]  ;;  %v1352_v7 = vmov 0.0   ;;  %vm114_vm0 = vcmask 261120   ;;  %s947_s13 = sld [smem:[#allocation7 + $0x100]] }
  0x3a   :  { %v1042_v3 = vpack.c.bf16 %v97_v1, %v95_v0  ;;  %v96_v4 = vld [vmem:[%s1714_s1 + $0x10] sm:$0xff]  ;;  %v99_v5 = vld [vmem:[%s1714_s1 + $0x28] sm:$0xff]  ;;  %v101_v6 = vld [vmem:[%s1714_s1 + $0x38] sm:$0xff]  ;;  %182 = vmatprep.mubr.f32.mxu0 %v1352_v7  ;;  %s946_s9 = sld [smem:[#allocation7 + $0x80]]  ;;  %s952_s15 = sld [smem:[#allocation7 + $0x181]]  ;;  %vm1355_vm1 = vmmov 0  }
  0x3b   :  { %v1044_v8 = vpack.c.bf16 %v96_v4, %v94_v2  ;;  %v1046_v9 = vpack.c.bf16 %v101_v6, %v99_v5  ;;  %v98_v10 = vld [vmem:[%s1714_s1 + $0x20] sm:$0xff]  ;;  %v100_v11 = vld [vmem:[%s1714_s1 + $0x30] sm:$0xff]  ;;  %v192_v12 = vld [vmem:[#allocation3 + $0x8] sm:$0xff]  ;;  %s948_s14 = sld [smem:[#allocation7 + $0x180]]  ;;  %s1354_s17 = smov 120   ;;  %vm750_vm2 = vcmask 1040384  }
  0x3c   :  { %1043 = vmatprep.subr.bf16.mxu0 %v1042_v3  ;;  %v196_v13 = vld [vmem:[#allocation3 + $0x28] sm:$0xff]  ;;  %v194_v14 = vld [vmem:[#allocation3 + $0x18] sm:$0xff]  ;;  %v1048_v15 = vpack.c.bf16 %v100_v11, %v98_v10  ;;  %v191_v18 = vld [vmem:[#allocation3] sm:$0xff]  ;;  %s949_s18 = sld [smem:[#allocation7 + $0x1]]  ;;  %s693_s19 = sld [smem:[#allocation7]]  ;;  %vm753_vm3 = vcmask 64512  }
  0x3d   :  { %1045 = vmatpush1.bf16.msra.mxu0 %v1044_v8  ;;  %v1050_v16 = vpack.c.bf16 %v196_v13, %v192_v12  ;;  %v198_v17 = vld [vmem:[#allocation3 + $0x38] sm:$0xff]  ;;  %v195_v19 = vld [vmem:[#allocation3 + $0x20] sm:$0xff]  ;;  %v193_v22 = vld [vmem:[#allocation3 + $0x10] sm:$0xff]  ;;  %s827_s20 = sld [smem:[#allocation8]]  ;;  %s954_s21 = sld [smem:[#allocation8 + $0x1]]  ;;  %vm926_vm4 = vcmask 57344  }
  0x3e   :  { %1047 = vmatprep.subr.bf16.mxu0 %v1046_v9  ;;  %v1114_v20 = vpack.c.bf16 %v198_v17, %v194_v14  ;;  %v1052_v21 = vpack.c.bf16 %v195_v19, %v191_v18  ;;  %v197_v23 = vld [vmem:[#allocation3 + $0x30] sm:$0xff]  ;;  %v200_v24 = vld [vmem:[#allocation3 + $0x48] sm:$0xff]  ;;  %v202_v26 = vld [vmem:[#allocation3 + $0x58] sm:$0xff]  ;;  %s955_s22 = sld [smem:[#allocation10 + $0x80]]  ;;  %s1357_s25 = smov [#allocation11]  }
  0x3f   :  { %1051 = vmatprep.subr.bf16.mxu1 %v1050_v16  ;;  %v204_v25 = vld [vmem:[#allocation3 + $0x68] sm:$0xff]  ;;  %v206_v27 = vld [vmem:[#allocation3 + $0x78] sm:$0xff]  ;;  %v199_v29 = vld [vmem:[#allocation3 + $0x40] sm:$0xff]  ;;  %v1116_v32 = vpack.c.bf16 %v197_v23, %v193_v22  ;;  %s835_s23 = sld [smem:[#allocation10]] }
  0x40   :  { %1053 = vmatpush1.bf16.msra.mxu1 %v1052_v21  ;;  %v1054_v28 = vpack.c.bf16 %v204_v25, %v200_v24  ;;  %v203_v30 = vld [vmem:[#allocation3 + $0x60] sm:$0xff]  ;;  %v208_v34 = vld [vmem:[#allocation3 + $0x88] sm:$0xff]  ;;  %v1118_v36 = vpack.c.bf16 %v206_v27, %v202_v26  ;;  %v201_v37 = vld [vmem:[#allocation3 + $0x50] sm:$0xff] }
  0x41   :  { %1049 = vmatpush1.bf16.msra.mxu0 %v1048_v15  ;;  %v93_v31 = vld [vmem:[%s1713_s0] sm:$0x1]  ;;  %v1056_v33 = vpack.c.bf16 %v203_v30, %v199_v29  ;;  %v212_v35 = vld [vmem:[#allocation3 + $0xa8] sm:$0xff]  ;;  %v205_v38 = vld [vmem:[#allocation3 + $0x70] sm:$0xff]  ;;  %s934_s0 = sshll.u32 %s1357_s25, 4  ;;  %s935_s0 = int_to_ptr.vmem [resolvable:$true] %s934_s0 }
  0x42   :  { %1115 = vmatprep.subr.bf16.mxu0 %v1114_v20  ;;  %1055 = vmatprep.subr.bf16.mxu1 %v1054_v28  ;;  %v1058_v39 = vpack.c.bf16 %v212_v35, %v208_v34  ;;  %v207_v40 = vld [vmem:[#allocation3 + $0x80] sm:$0xff]  ;;  %v210_v41 = vld [vmem:[#allocation3 + $0x98] sm:$0xff]  ;;  %v216_v45 = vld [vmem:[#allocation3 + $0xc8] sm:$0xff]  ;;  %v1120_v47 = vpack.c.bf16 %v205_v38, %v201_v37  ;;  %s1316_s26 = scalar_lea.vmem %s935_s0, 16  ;;  %s1320_s28 = scalar_lea.vmem %s935_s0, 32 }
  0x43   :  { %v214_v42 = vld [vmem:[#allocation3 + $0xb8] sm:$0xff]  ;;  %v211_v43 = vld [vmem:[#allocation3 + $0xa0] sm:$0xff]  ;;  %v220_v46 = vld [vmem:[#allocation3 + $0xe8] sm:$0xff]  ;;  %p1317_p9 = scmp.ne.s32.totalorder %s935_s0, %s1316_s26  ;;  %p1321_p10 = scmp.lt.s32.totalorder %s935_s0, %s935_s0 }
  0x44   :  { %945 = vmatmul.mubr.msk.f32.vlgmr.msra.gmra.mrb[0].mxu0 %vm114_vm0, %v93_v31  ;;  %1057 = vmatpush1.bf16.msra.mxu1 %v1056_v33  ;;  %v1060_v44 = vpack.c.bf16 %v211_v43, %v207_v40  ;;  %v1062_v48 = vpack.c.bf16 %v220_v46, %v216_v45  ;;  %v215_v49 = vld [vmem:[#allocation3 + $0xc0] sm:$0xff]  ;;  %v1122_v51 = vpack.c.bf16 %v214_v42, %v210_v41  ;;  %v209_v52 = vld [vmem:[#allocation3 + $0x90] sm:$0xff]  ;;  %v224_v54 = vld [vmem:[#allocation3 + $0x108] sm:$0xff]  ;;  %p1322_p11 = scmp.lt.s32.totalorder %s1320_s28, %s1316_s26 }
  0x45   :  { %1117 = vmatpush1.bf16.msra.mxu0 %v1116_v32  ;;  %1059 = vmatprep.subr.bf16.mxu1 %v1058_v39  ;;  %v219_v50 = vld [vmem:[#allocation3 + $0xe0] sm:$0xff]  ;;  %v213_v53 = vld [vmem:[#allocation3 + $0xb0] sm:$0xff]  ;;  %v218_v55 = vld [vmem:[#allocation3 + $0xd8] sm:$0xff] }
  0x46   :  { %1119 = vmatprep.subr.bf16.mxu0 %v1118_v36  ;;  %v222_v56 = vld [vmem:[#allocation3 + $0xf8] sm:$0xff]  ;;  %v228_v57 = vld [vmem:[#allocation3 + $0x128] sm:$0xff]  ;;  %v1064_v58 = vpack.c.bf16 %v219_v50, %v215_v49  ;;  %v1124_v59 = vpack.c.bf16 %v213_v53, %v209_v52  ;;  %v217_v60 = vld [vmem:[#allocation3 + $0xd0] sm:$0xff]  ;;  %p1323_p12 = por %p1322_p11, %p1321_p10 }
  0x47   :  { %v1066_v61 = vpack.c.bf16 %v228_v57, %v224_v54  ;;  %v223_v62 = vld [vmem:[#allocation3 + $0x100] sm:$0xff]  ;;  %v1126_v0 = vpack.c.bf16 %v222_v56, %v218_v55  ;;  %v221_v1 = vld [vmem:[#allocation3 + $0xf0] sm:$0xff]  ;;  %v232_v2 = vld [vmem:[#allocation3 + $0x148] sm:$0xff] }
  0x48   :  { %1061 = vmatpush1.bf16.msra.mxu1 %v1060_v44  ;;  %v227_v63 = vld [vmem:[#allocation3 + $0x120] sm:$0xff]  ;;  %v236_v3 = vld [vmem:[#allocation3 + $0x168] sm:$0xff]  ;;  %v226_v4 = vld [vmem:[#allocation3 + $0x118] sm:$0xff]  ;;  %v1128_v8 = vpack.c.bf16 %v221_v1, %v217_v60  ;;  %p1324_p13 = pnand %p1323_p12, %p1317_p9 }
  0x49   :  { %1121 = vmatpush1.bf16.msra.mxu0 %v1120_v47  ;;  %1063 = vmatprep.subr.bf16.mxu1 %v1062_v48  ;;  %v230_v5 = vld [vmem:[#allocation3 + $0x138] sm:$0xff]  ;;  %v1068_v6 = vpack.c.bf16 %v227_v63, %v223_v62  ;;  %v225_v9 = vld [vmem:[#allocation3 + $0x110] sm:$0xff]  ;;  %v1070_v10 = vpack.c.bf16 %v236_v3, %v232_v2  ;;  %v231_v11 = vld [vmem:[#allocation3 + $0x140] sm:$0xff] }
  0x4a   :  { %1123 = vmatprep.subr.bf16.mxu0 %v1122_v51  ;;  %v235_v12 = vld [vmem:[#allocation3 + $0x160] sm:$0xff]  ;;  %v1130_v13 = vpack.c.bf16 %v230_v5, %v226_v4  ;;  %v229_v14 = vld [vmem:[#allocation3 + $0x130] sm:$0xff]  ;;  %v240_v15 = vld [vmem:[#allocation3 + $0x188] sm:$0xff] }
  0x4b   :  { %v244_v16 = vld [vmem:[#allocation3 + $0x1a8] sm:$0xff]  ;;  %v234_v17 = vld [vmem:[#allocation3 + $0x158] sm:$0xff]  ;;  %v1072_v19 = vpack.c.bf16 %v235_v12, %v231_v11  ;;  %v1132_v20 = vpack.c.bf16 %v229_v14, %v225_v9  ;;  %v233_v21 = vld [vmem:[#allocation3 + $0x150] sm:$0xff] }
  0x4c   :  { %1065 = vmatpush1.bf16.msra.mxu1 %v1064_v58  ;;  %v238_v18 = vld [vmem:[#allocation3 + $0x178] sm:$0xff]  ;;  %v1074_v22 = vpack.c.bf16 %v244_v16, %v240_v15  ;;  %v239_v23 = vld [vmem:[#allocation3 + $0x180] sm:$0xff]  ;;  %v237_v26 = vld [vmem:[#allocation3 + $0x170] sm:$0xff] }
  0x4d   :  { %1125 = vmatpush1.bf16.msra.mxu0 %v1124_v59  ;;  %1067 = vmatprep.subr.bf16.mxu1 %v1066_v61  ;;  %v243_v24 = vld [vmem:[#allocation3 + $0x1a0] sm:$0xff]  ;;  %v1134_v25 = vpack.c.bf16 %v238_v18, %v234_v17  ;;  %v248_v27 = vld [vmem:[#allocation3 + $0x1c8] sm:$0xff]  ;;  %v242_v29 = vld [vmem:[#allocation3 + $0x198] sm:$0xff]  ;;  %v1136_v32 = vpack.c.bf16 %v237_v26, %v233_v21 }
  0x4e   :  { %1127 = vmatprep.subr.bf16.mxu0 %v1126_v0  ;;  %v252_v28 = vld [vmem:[#allocation3 + $0x1e8] sm:$0xff]  ;;  %v246_v30 = vld [vmem:[#allocation3 + $0x1b8] sm:$0xff]  ;;  %v1076_v31 = vpack.c.bf16 %v243_v24, %v239_v23  ;;  %v241_v33 = vld [vmem:[#allocation3 + $0x190] sm:$0xff] }
  0x4f   :  { %v1078_v34 = vpack.c.bf16 %v252_v28, %v248_v27  ;;  %v247_v35 = vld [vmem:[#allocation3 + $0x1c0] sm:$0xff]  ;;  %v1138_v37 = vpack.c.bf16 %v246_v30, %v242_v29  ;;  %v245_v38 = vld [vmem:[#allocation3 + $0x1b0] sm:$0xff]  ;;  %v256_v39 = vld [vmem:[#allocation3 + $0x208] sm:$0xff] }
  0x50   :  { %1069 = vmatpush1.bf16.msra.mxu1 %v1068_v6  ;;  %v251_v36 = vld [vmem:[#allocation3 + $0x1e0] sm:$0xff]  ;;  %v260_v40 = vld [vmem:[#allocation3 + $0x228] sm:$0xff]  ;;  %v250_v41 = vld [vmem:[#allocation3 + $0x1d8] sm:$0xff]  ;;  %v1140_v44 = vpack.c.bf16 %v245_v38, %v241_v33 }
  0x51   :  { %1129 = vmatpush1.bf16.msra.mxu0 %v1128_v8  ;;  %1071 = vmatprep.subr.bf16.mxu1 %v1070_v10  ;;  %v254_v42 = vld [vmem:[#allocation3 + $0x1f8] sm:$0xff]  ;;  %v1080_v43 = vpack.c.bf16 %v251_v36, %v247_v35  ;;  %v249_v45 = vld [vmem:[#allocation3 + $0x1d0] sm:$0xff]  ;;  %v1082_v46 = vpack.c.bf16 %v260_v40, %v256_v39  ;;  %v255_v47 = vld [vmem:[#allocation3 + $0x200] sm:$0xff] }
  0x52   :  { %1131 = vmatprep.subr.bf16.mxu0 %v1130_v13  ;;  %v259_v48 = vld [vmem:[#allocation3 + $0x220] sm:$0xff]  ;;  %v1142_v49 = vpack.c.bf16 %v254_v42, %v250_v41  ;;  %v253_v50 = vld [vmem:[#allocation3 + $0x1f0] sm:$0xff]  ;;  %v264_v51 = vld [vmem:[#allocation3 + $0x248] sm:$0xff] }
  0x53   :  { %v268_v52 = vld [vmem:[#allocation3 + $0x268] sm:$0xff]  ;;  %v258_v53 = vld [vmem:[#allocation3 + $0x218] sm:$0xff]  ;;  %v1084_v55 = vpack.c.bf16 %v259_v48, %v255_v47  ;;  %v1144_v56 = vpack.c.bf16 %v253_v50, %v249_v45  ;;  %v257_v57 = vld [vmem:[#allocation3 + $0x210] sm:$0xff] }
  0x54   :  { %1073 = vmatpush1.bf16.msra.mxu1 %v1072_v19  ;;  %v262_v54 = vld [vmem:[#allocation3 + $0x238] sm:$0xff]  ;;  %v1086_v58 = vpack.c.bf16 %v268_v52, %v264_v51  ;;  %v263_v59 = vld [vmem:[#allocation3 + $0x240] sm:$0xff]  ;;  %v261_v62 = vld [vmem:[#allocation3 + $0x230] sm:$0xff] }
  0x55   :  { %1133 = vmatpush1.bf16.msra.mxu0 %v1132_v20  ;;  %1075 = vmatprep.subr.bf16.mxu1 %v1074_v22  ;;  %v267_v60 = vld [vmem:[#allocation3 + $0x260] sm:$0xff]  ;;  %v1146_v61 = vpack.c.bf16 %v262_v54, %v258_v53  ;;  %v272_v63 = vld [vmem:[#allocation3 + $0x288] sm:$0xff]  ;;  %v266_v1 = vld [vmem:[#allocation3 + $0x258] sm:$0xff]  ;;  %v1148_v4 = vpack.c.bf16 %v261_v62, %v257_v57 }
  0x56   :  { %1135 = vmatprep.subr.bf16.mxu0 %v1134_v25  ;;  %v276_v0 = vld [vmem:[#allocation3 + $0x2a8] sm:$0xff]  ;;  %v270_v2 = vld [vmem:[#allocation3 + $0x278] sm:$0xff]  ;;  %v1088_v3 = vpack.c.bf16 %v267_v60, %v263_v59  ;;  %v265_v5 = vld [vmem:[#allocation3 + $0x250] sm:$0xff] }
  0x57   :  { %v1090_v6 = vpack.c.bf16 %v276_v0, %v272_v63  ;;  %v271_v8 = vld [vmem:[#allocation3 + $0x280] sm:$0xff]  ;;  %v1150_v10 = vpack.c.bf16 %v270_v2, %v266_v1  ;;  %v269_v11 = vld [vmem:[#allocation3 + $0x270] sm:$0xff]  ;;  %v280_v12 = vld [vmem:[#allocation3 + $0x2c8] sm:$0xff] }
  0x58   :  { %1077 = vmatpush1.bf16.msra.mxu1 %v1076_v31  ;;  %v275_v9 = vld [vmem:[#allocation3 + $0x2a0] sm:$0xff]  ;;  %v284_v13 = vld [vmem:[#allocation3 + $0x2e8] sm:$0xff]  ;;  %v274_v14 = vld [vmem:[#allocation3 + $0x298] sm:$0xff]  ;;  %v1152_v17 = vpack.c.bf16 %v269_v11, %v265_v5 }
  0x59   :  { %1137 = vmatpush1.bf16.msra.mxu0 %v1136_v32  ;;  %1079 = vmatprep.subr.bf16.mxu1 %v1078_v34  ;;  %v278_v15 = vld [vmem:[#allocation3 + $0x2b8] sm:$0xff]  ;;  %v1092_v16 = vpack.c.bf16 %v275_v9, %v271_v8  ;;  %v273_v18 = vld [vmem:[#allocation3 + $0x290] sm:$0xff]  ;;  %v1094_v19 = vpack.c.bf16 %v284_v13, %v280_v12  ;;  %v279_v20 = vld [vmem:[#allocation3 + $0x2c0] sm:$0xff] }
  0x5a   :  { %1139 = vmatprep.subr.bf16.mxu0 %v1138_v37  ;;  %v283_v21 = vld [vmem:[#allocation3 + $0x2e0] sm:$0xff]  ;;  %v1154_v22 = vpack.c.bf16 %v278_v15, %v274_v14  ;;  %v277_v23 = vld [vmem:[#allocation3 + $0x2b0] sm:$0xff]  ;;  %v288_v24 = vld [vmem:[#allocation3 + $0x308] sm:$0xff] }
  0x5b   :  { %v292_v25 = vld [vmem:[#allocation3 + $0x328] sm:$0xff]  ;;  %v282_v26 = vld [vmem:[#allocation3 + $0x2d8] sm:$0xff]  ;;  %v1096_v28 = vpack.c.bf16 %v283_v21, %v279_v20  ;;  %v1156_v29 = vpack.c.bf16 %v277_v23, %v273_v18  ;;  %v281_v30 = vld [vmem:[#allocation3 + $0x2d0] sm:$0xff]  ;;  %v104_v23 = vlaneseq }
  0x5c   :  { %1081 = vmatpush1.bf16.msra.mxu1 %v1080_v43  ;;  %v286_v27 = vld [vmem:[#allocation3 + $0x2f8] sm:$0xff]  ;;  %v1098_v31 = vpack.c.bf16 %v292_v25, %v288_v24  ;;  %v287_v32 = vld [vmem:[#allocation3 + $0x300] sm:$0xff]  ;;  %v285_v35 = vld [vmem:[#allocation3 + $0x2f0] sm:$0xff] }
  0x5d   :  { %1141 = vmatpush1.bf16.msra.mxu0 %v1140_v44  ;;  %1083 = vmatprep.subr.bf16.mxu1 %v1082_v46  ;;  %v291_v33 = vld [vmem:[#allocation3 + $0x320] sm:$0xff]  ;;  %v1158_v34 = vpack.c.bf16 %v286_v27, %v282_v26  ;;  %v296_v36 = vld [vmem:[#allocation3 + $0x348] sm:$0xff]  ;;  %v290_v38 = vld [vmem:[#allocation3 + $0x318] sm:$0xff]  ;;  %v1160_v41 = vpack.c.bf16 %v285_v35, %v281_v30  ;;  %v1484_v24 = vshrl.u32 %v104_v23, 7 }
  0x5e   :  { %1143 = vmatprep.subr.bf16.mxu0 %v1142_v49  ;;  %v300_v37 = vld [vmem:[#allocation3 + $0x368] sm:$0xff]  ;;  %v294_v39 = vld [vmem:[#allocation3 + $0x338] sm:$0xff]  ;;  %v1100_v40 = vpack.c.bf16 %v291_v33, %v287_v32  ;;  %v289_v42 = vld [vmem:[#allocation3 + $0x310] sm:$0xff] }
  0x5f   :  { %v1102_v43 = vpack.c.bf16 %v300_v37, %v296_v36  ;;  %v295_v44 = vld [vmem:[#allocation3 + $0x340] sm:$0xff]  ;;  %v1162_v46 = vpack.c.bf16 %v294_v39, %v290_v38  ;;  %v293_v47 = vld [vmem:[#allocation3 + $0x330] sm:$0xff]  ;;  %v304_v48 = vld [vmem:[#allocation3 + $0x388] sm:$0xff]  ;;  %v106_v25 = vsub.s32 0, %v1484_v24  ;;  %v110_v27 = vsub.s32 1, %v1484_v24 }
  0x60   :  { %1085 = vmatpush1.bf16.msra.mxu1 %v1084_v55  ;;  %v299_v45 = vld [vmem:[#allocation3 + $0x360] sm:$0xff]  ;;  %v308_v49 = vld [vmem:[#allocation3 + $0x3a8] sm:$0xff]  ;;  %v298_v50 = vld [vmem:[#allocation3 + $0x358] sm:$0xff]  ;;  %v1164_v53 = vpack.c.bf16 %v293_v47, %v289_v42 }
  0x61   :  { %1145 = vmatpush1.bf16.msra.mxu0 %v1144_v56  ;;  %1087 = vmatprep.subr.bf16.mxu1 %v1086_v58  ;;  %v302_v51 = vld [vmem:[#allocation3 + $0x378] sm:$0xff]  ;;  %v1104_v52 = vpack.c.bf16 %v299_v45, %v295_v44  ;;  %v1106_v54 = vpack.c.bf16 %v308_v49, %v304_v48  ;;  %v297_v56 = vld [vmem:[#allocation3 + $0x350] sm:$0xff]  ;;  %v303_v62 = vld [vmem:[#allocation3 + $0x380] sm:$0xff] }
  0x62   :  { %1147 = vmatprep.subr.bf16.mxu0 %v1146_v61  ;;  %v1166_v55 = vpack.c.bf16 %v302_v51, %v298_v50  ;;  %v301_v57 = vld [vmem:[#allocation3 + $0x370] sm:$0xff]  ;;  %v306_v58 = vld [vmem:[#allocation3 + $0x398] sm:$0xff]  ;;  %v307_v63 = vld [vmem:[#allocation3 + $0x3a0] sm:$0xff] }
  0x63   :  { %v310_v59 = vld [vmem:[#allocation3 + $0x3b8] sm:$0xff]  ;;  %v1168_v60 = vpack.c.bf16 %v301_v57, %v297_v56  ;;  %v305_v0 = vld [vmem:[#allocation3 + $0x390] sm:$0xff]  ;;  %v1108_v1 = vpack.c.bf16 %v307_v63, %v303_v62  ;;  %v316_v5 = vld [vmem:[#allocation3 + $0x3e8] sm:$0xff] }
  0x64   :  { %1089 = vmatpush1.bf16.msra.mxu1 %v1088_v3  ;;  %v1170_v61 = vpack.c.bf16 %v310_v59, %v306_v58  ;;  %v309_v2 = vld [vmem:[#allocation3 + $0x3b0] sm:$0xff]  ;;  %v318_v9 = vld [vmem:[#allocation3 + $0x3f8] sm:$0xff]  ;;  %v315_v11 = vld [vmem:[#allocation3 + $0x3e0] sm:$0xff] }
  0x65   :  { %1149 = vmatpush1.bf16.msra.mxu0 %v1148_v4  ;;  %1091 = vmatprep.subr.bf16.mxu1 %v1090_v6  ;;  %v1172_v3 = vpack.c.bf16 %v309_v2, %v305_v0  ;;  %v312_v4 = vld [vmem:[#allocation3 + $0x3c8] sm:$0xff]  ;;  %v314_v6 = vld [vmem:[#allocation3 + $0x3d8] sm:$0xff]  ;;  %v313_v14 = vld [vmem:[#allocation3 + $0x3d0] sm:$0xff] }
  0x66   :  { %1151 = vmatprep.subr.bf16.mxu0 %v1150_v10  ;;  %v1110_v8 = vpack.c.bf16 %v316_v5, %v312_v4  ;;  %v311_v10 = vld [vmem:[#allocation3 + $0x3c0] sm:$0xff]  ;;  %v1174_v12 = vpack.c.bf16 %v318_v9, %v314_v6  ;;  %v317_v15 = vld [vmem:[#allocation3 + $0x3f0] sm:$0xff]  ;;  %v504_v18 = vld [vmem:[%s1718_s5 + $0x88] sm:$0xff] }
  0x67   :  { %v1112_v13 = vpack.c.bf16 %v315_v11, %v311_v10  ;;  %v536_v21 = vld [vmem:[%s1718_s5 + $0x188] sm:$0xff]  ;;  %v102_v26 = vld [vmem:[%s1715_s2] sm:$0x3]  ;;  %v505_v37 = vld [vmem:[%s1718_s5 + $0x90] sm:$0xff] }
  0x68   :  { %1093 = vmatpush1.bf16.msra.mxu1 %v1092_v16  ;;  %v1176_v16 = vpack.c.bf16 %v317_v15, %v313_v14  ;;  %v488_v32 = vld [vmem:[%s1718_s5 + $0x8] sm:$0xff]  ;;  %v519_v35 = vld [vmem:[%s1718_s5 + $0x100] sm:$0xff]  ;;  %v506_v39 = vld [vmem:[%s1718_s5 + $0x98] sm:$0xff] }
  0x69   :  { %1153 = vmatpush1.bf16.msra.mxu0 %v1152_v17  ;;  %1095 = vmatprep.subr.bf16.mxu1 %v1094_v19  ;;  %v503_v17 = vld [vmem:[%s1718_s5 + $0x80] sm:$0xff]  ;;  %v520_v36 = vld [vmem:[%s1718_s5 + $0x108] sm:$0xff]  ;;  %v489_v45 = vld [vmem:[%s1718_s5 + $0x10] sm:$0xff]  ;;  %v1182_v48 = vpack.c.bf16 %v506_v39, %v505_v37 }
  0x6a   :  { %1155 = vmatprep.subr.bf16.mxu0 %v1154_v22  ;;  %v535_v19 = vld [vmem:[%s1718_s5 + $0x180] sm:$0xff]  ;;  %v1178_v20 = vpack.c.bf16 %v504_v18, %v503_v17  ;;  %v1212_v44 = vpack.c.bf16 %v520_v36, %v519_v35  ;;  %v521_v50 = vld [vmem:[%s1718_s5 + $0x110] sm:$0xff]  ;;  %v522_v51 = vld [vmem:[%s1718_s5 + $0x118] sm:$0xff] }
  0x6b   :  { %v1210_v22 = vpack.c.bf16 %v536_v21, %v535_v19  ;;  %v1216_v57 = vpack.c.bf16 %v522_v51, %v521_v50  ;;  %v491_v58 = vld [vmem:[%s1718_s5 + $0x20] sm:$0xff]  ;;  %v492_v59 = vld [vmem:[%s1718_s5 + $0x28] sm:$0xff]  ;;  %v509_v0 = vld [vmem:[%s1718_s5 + $0xb0] sm:$0xff] }
  0x6c   :  { %1097 = vmatpush1.bf16.msra.mxu1 %v1096_v28  ;;  %v107_v28 = vrot.slane %v102_v26, %v106_v25  ;;  %v523_v62 = vld [vmem:[%s1718_s5 + $0x120] sm:$0xff]  ;;  %v524_v63 = vld [vmem:[%s1718_s5 + $0x128] sm:$0xff]  ;;  %v541_v2 = vld [vmem:[%s1718_s5 + $0x1b0] sm:$0xff]  ;;  %v1188_v4 = vpack.c.bf16 %v492_v59, %v491_v58 }
  0x6d   :  { %1157 = vmatpush1.bf16.msra.mxu0 %v1156_v29  ;;  %1099 = vmatprep.subr.bf16.mxu1 %v1098_v31  ;;  %v111_v29 = vrot.slane %v102_v26, %v110_v27  ;;  %v487_v31 = vld [vmem:[%s1718_s5] sm:$0xff]  ;;  %v1220_v5 = vpack.c.bf16 %v524_v63, %v523_v62  ;;  %v493_v6 = vld [vmem:[%s1718_s5 + $0x30] sm:$0xff]  ;;  %v512_v14 = vld [vmem:[%s1718_s5 + $0xc8] sm:$0xff] }
  0x6e   :  { %1159 = vmatprep.subr.bf16.mxu0 %v1158_v34  ;;  %v525_v11 = vld [vmem:[%s1718_s5 + $0x130] sm:$0xff]  ;;  %v543_v15 = vld [vmem:[%s1718_s5 + $0x1c0] sm:$0xff]  ;;  %v528_v26 = vld [vmem:[%s1718_s5 + $0x148] sm:$0xff] }
  0x6f   :  { %v495_v19 = vld [vmem:[%s1718_s5 + $0x40] sm:$0xff]  ;;  %v498_v35 = vld [vmem:[%s1718_s5 + $0x58] sm:$0xff]  ;;  %v501_v59 = vld [vmem:[%s1718_s5 + $0x70] sm:$0xff] }
  0x70   :  { %1101 = vmatpush1.bf16.msra.mxu1 %v1100_v40  ;;  %v537_v40 = vld [vmem:[%s1718_s5 + $0x190] sm:$0xff]  ;;  %v527_v23 = vld [vmem:[%s1718_s5 + $0x140] sm:$0xff]  ;;  %v530_v39 = vld [vmem:[%s1718_s5 + $0x158] sm:$0xff] }
  0x71   :  { %1161 = vmatpush1.bf16.msra.mxu0 %v1160_v41  ;;  %1103 = vmatprep.subr.bf16.mxu1 %v1102_v43  ;;  %v538_v41 = vld [vmem:[%s1718_s5 + $0x198] sm:$0xff]  ;;  %v1180_v43 = vpack.c.bf16 %v488_v32, %v487_v31  ;;  %v531_v50 = vld [vmem:[%s1718_s5 + $0x160] sm:$0xff]  ;;  %v533_v63 = vld [vmem:[%s1718_s5 + $0x170] sm:$0xff] }
  0x72   :  { %1163 = vmatprep.subr.bf16.mxu0 %v1162_v46  ;;  %v490_v46 = vld [vmem:[%s1718_s5 + $0x18] sm:$0xff]  ;;  %v1214_v49 = vpack.c.bf16 %v538_v41, %v537_v40  ;;  %v515_v40 = vld [vmem:[%s1718_s5 + $0xe0] sm:$0xff]  ;;  %v516_v41 = vld [vmem:[%s1718_s5 + $0xe8] sm:$0xff] }
  0x73   :  { %v1184_v56 = vpack.c.bf16 %v490_v46, %v489_v45  ;;  %v546_v31 = vld [vmem:[%s1718_s5 + $0x1d8] sm:$0xff]  ;;  %v1202_v46 = vpack.c.bf16 %v516_v41, %v515_v40  ;;  %v713_v41 = vstv %s948_s14 }
  0x74   :  { %1105 = vmatpush1.bf16.msra.mxu1 %v1104_v52  ;;  %v507_v52 = vld [vmem:[%s1718_s5 + $0xa0] sm:$0xff]  ;;  %v550_v58 = vld [vmem:[%s1718_s5 + $0x1f8] sm:$0xff] }
  0x75   :  { %1165 = vmatpush1.bf16.msra.mxu0 %v1164_v53  ;;  %1107 = vmatprep.subr.bf16.mxu1 %v1106_v54  ;;  %v508_v53 = vld [vmem:[%s1718_s5 + $0xa8] sm:$0xff]  ;;  %v539_v54 = vld [vmem:[%s1718_s5 + $0x1a0] sm:$0xff] }
  0x76   :  { %1167 = vmatprep.subr.bf16.mxu0 %v1166_v55  ;;  %v540_v55 = vld [vmem:[%s1718_s5 + $0x1a8] sm:$0xff] }
  0x78   :  { %1109 = vmatpush1.bf16.msra.mxu1 %v1108_v1  ;;  %v510_v1 = vld [vmem:[%s1718_s5 + $0xb8] sm:$0xff] }
  0x79   :  { %1169 = vmatpush1.bf16.msra.mxu0 %v1168_v60  ;;  %1111 = vmatprep.subr.bf16.mxu1 %v1110_v8  ;;  %v1186_v60 = vpack.c.bf16 %v508_v53, %v507_v52  ;;  %v494_v8 = vld [vmem:[%s1718_s5 + $0x38] sm:$0xff]  ;;  %v1190_v9 = vpack.c.bf16 %v510_v1, %v509_v0  ;;  %v532_v52 = vld [vmem:[%s1718_s5 + $0x168] sm:$0xff] }
  0x7a   :  { %1171 = vmatprep.subr.bf16.mxu0 %v1170_v61  ;;  %v1218_v61 = vpack.c.bf16 %v540_v55, %v539_v54  ;;  %v1192_v17 = vpack.c.bf16 %v494_v8, %v493_v6  ;;  %v1236_v53 = vpack.c.bf16 %v532_v52, %v531_v50  ;;  %v517_v54 = vld [vmem:[%s1718_s5 + $0xf0] sm:$0xff]  ;;  %v518_v55 = vld [vmem:[%s1718_s5 + $0xf8] sm:$0xff] }
  0x7b   :  { %v534_v0 = vld [vmem:[%s1718_s5 + $0x178] sm:$0xff] }
  0x7c   :  { %1113 = vmatpush1.bf16.msra.mxu1 %v1112_v13  ;;  %v511_v13 = vld [vmem:[%s1718_s5 + $0xc0] sm:$0xff]  ;;  %v1240_v1 = vpack.c.bf16 %v534_v0, %v533_v63  ;;  %v828_v63 = vstv %s827_s20  ;;  %v832_v0 = vstv %s954_s21 }
  0x7d   :  { %1173 = vmatpush1.bf16.msra.mxu0 %v1172_v3  ;;  %1179 = vmatprep.subr.bf16.mxu1 %v1178_v20  ;;  %v542_v3 = vld [vmem:[%s1718_s5 + $0x1b8] sm:$0xff]  ;;  %v496_v20 = vld [vmem:[%s1718_s5 + $0x48] sm:$0xff]  ;;  %v1194_v21 = vpack.c.bf16 %v512_v14, %v511_v13 }
  0x7e   :  { %1175 = vmatprep.subr.bf16.mxu0 %v1174_v12  ;;  %v1222_v10 = vpack.c.bf16 %v542_v3, %v541_v2  ;;  %v526_v12 = vld [vmem:[%s1718_s5 + $0x138] sm:$0xff]  ;;  %v1196_v32 = vpack.c.bf16 %v496_v20, %v495_v19  ;;  %v331_v2 = vsub.s32 2, %v1484_v24  ;;  %v319_v3 = vld [vmem:[%s1717_s4] sm:$0xf]  ;;  %s951_s4 = sld [smem:[#allocation7 + $0x101]] }
  0x7f   :  { %v1224_v18 = vpack.c.bf16 %v526_v12, %v525_v11  ;;  %v328_v8 = vrot.slane %v319_v3, %v110_v27  ;;  %v551_v27 = vld [vmem:[%s1719_s6] sm:$0x1]  ;;  %s1353_s6 = smov 112  }
  0x80   :  { %v332_v6 = vrot.slane %v319_v3, %v331_v2 }
  0x81   :  { %1177 = vmatpush1.bf16.msra.mxu0 %v1176_v16  ;;  %v544_v16 = vld [vmem:[%s1718_s5 + $0x1c8] sm:$0xff] }
  0x82   :  { %1211 = vmatprep.subr.bf16.mxu0 %v1210_v22  ;;  %v1226_v22 = vpack.c.bf16 %v544_v16, %v543_v15 }
 0x117   :  { %v184_v30 = vpop.f32.mrb[0].mxu0 }
 0x118   :  { %v185_v33 = vadd.f32 %v184_v30, %v107_v28  ;;  %v186_v34 = vpop.f32.mrb[1].mxu0  ;;  %v513_v28 = vld [vmem:[%s1718_s5 + $0xd0] sm:$0xff] }
 0x119   :  { %v187_v38 = vadd.f32 %v186_v34, %v111_v29  ;;  %v514_v29 = vld [vmem:[%s1718_s5 + $0xd8] sm:$0xff]  ;;  %v545_v30 = vld [vmem:[%s1718_s5 + $0x1d0] sm:$0xff] }
 0x11a   :  { %v189_v47 = vmax.f32 %v185_v33, 0.0  ;;  %v1228_v33 = vpack.c.bf16 %v528_v26, %v527_v23  ;;  %v497_v34 = vld [vmem:[%s1718_s5 + $0x50] sm:$0xff]  ;;  %v1198_v36 = vpack.c.bf16 %v514_v29, %v513_v28  ;;  %v1230_v37 = vpack.c.bf16 %v546_v31, %v545_v30 }
 0x11b   :  { %v190_v42 = vmax.f32 %v187_v38, 0.0  ;;  %v529_v38 = vld [vmem:[%s1718_s5 + $0x150] sm:$0xff]  ;;  %v732_v31 = vstv %s951_s4 }
 0x11c   :  { %v1232_v45 = vpack.c.bf16 %v530_v39, %v529_v38  ;;  %v752_v38 = vld [vmem:[%s1720_s7] sm:$0xff]  ;;  %s1356_s7 = smov 104  }
 0x11d   :  { %405 = vmatprep.mubr.f32.mxu1 %v190_v42  ;;  %476 = vmatprep.mubr.f32.mxu0 %v190_v42  ;;  %v547_v42 = vld [vmem:[%s1718_s5 + $0x1e0] sm:$0xff] }
 0x11e   :  { %406 = vmatmul.mubr.f32.vlgmr.msra.gmra.mrb[0].mxu1 %v189_v47  ;;  %477 = vmatmul.mubr.f32.vlgmr.msra.gmra.mrb[2].mxu0 %v189_v47 }
 0x11f   :  { %1181 = vmatpush3.bf16.msra.mxu1 %v1180_v43  ;;  %1213 = vmatpush3.bf16.msra.mxu0 %v1212_v44  ;;  %v548_v43 = vld [vmem:[%s1718_s5 + $0x1e8] sm:$0xff]  ;;  %v1200_v44 = vpack.c.bf16 %v498_v35, %v497_v34 }
 0x120   :  { %1183 = vmatprep.subr.bf16.mxu1 %v1182_v48  ;;  %1215 = vmatprep.subr.bf16.mxu0 %v1214_v49  ;;  %v1234_v47 = vpack.c.bf16 %v548_v43, %v547_v42  ;;  %v499_v48 = vld [vmem:[%s1718_s5 + $0x60] sm:$0xff]  ;;  %v500_v49 = vld [vmem:[%s1718_s5 + $0x68] sm:$0xff]  ;;  %v740_v42 = vstv %s952_s15 }
 0x121   :  { %v1204_v51 = vpack.c.bf16 %v500_v49, %v499_v48  ;;  %v694_v48 = vstv %s693_s19 }
 0x123   :  { %1185 = vmatpush3.bf16.msra.mxu1 %v1184_v56  ;;  %1217 = vmatpush3.bf16.msra.mxu0 %v1216_v57  ;;  %v549_v56 = vld [vmem:[%s1718_s5 + $0x1f0] sm:$0xff]  ;;  %v1206_v57 = vpack.c.bf16 %v518_v55, %v517_v54 }
 0x124   :  { %1187 = vmatprep.subr.bf16.mxu1 %v1186_v60  ;;  %1219 = vmatprep.subr.bf16.mxu0 %v1218_v61  ;;  %v502_v60 = vld [vmem:[%s1718_s5 + $0x78] sm:$0xff]  ;;  %v1238_v61 = vpack.c.bf16 %v550_v58, %v549_v56  ;;  %s950_s5 = sld [smem:[#allocation7 + $0x81]] }
 0x125   :  { %v1208_v62 = vpack.c.bf16 %v502_v60, %v501_v59 }
 0x127   :  { %1189 = vmatpush3.bf16.msra.mxu1 %v1188_v4  ;;  %1221 = vmatpush3.bf16.msra.mxu0 %v1220_v5  ;;  %v335_v4 = vsub.s32 3, %v1484_v24  ;;  %v324_v5 = vrot.slane %v319_v3, %v106_v25 }
 0x128   :  { %1191 = vmatprep.subr.bf16.mxu1 %v1190_v9  ;;  %1223 = vmatprep.subr.bf16.mxu0 %v1222_v10 }
 0x129   :  { %v336_v9 = vrot.slane %v319_v3, %v335_v4 }
 0x12b   :  { %1193 = vmatpush3.bf16.msra.mxu1 %v1192_v17  ;;  %1225 = vmatpush3.bf16.msra.mxu0 %v1224_v18 }
 0x12c   :  { %1195 = vmatprep.subr.bf16.mxu1 %v1194_v21  ;;  %1227 = vmatprep.subr.bf16.mxu0 %v1226_v22 }
 0x12f   :  { %1197 = vmatpush3.bf16.msra.mxu1 %v1196_v32  ;;  %1229 = vmatpush3.bf16.msra.mxu0 %v1228_v33  ;;  %v724_v32 = vstv %s950_s5 }
 0x130   :  { %1199 = vmatprep.subr.bf16.mxu1 %v1198_v36  ;;  %1231 = vmatprep.subr.bf16.mxu0 %v1230_v37  ;;  %v705_v36 = vstv %s947_s13  ;;  %v697_v37 = vstv %s946_s9 }
 0x133   :  { %1201 = vmatpush3.bf16.msra.mxu1 %v1200_v44  ;;  %1233 = vmatpush3.bf16.msra.mxu0 %v1232_v45  ;;  %v721_v45 = vstv %s949_s18 }
 0x134   :  { %1203 = vmatprep.subr.bf16.mxu1 %v1202_v46  ;;  %1235 = vmatprep.subr.bf16.mxu0 %v1234_v47 }
 0x137   :  { %1205 = vmatpush3.bf16.msra.mxu1 %v1204_v51  ;;  %1237 = vmatpush3.bf16.msra.mxu0 %v1236_v53 }
 0x138   :  { %1207 = vmatprep.subr.bf16.mxu1 %v1206_v57  ;;  %1239 = vmatprep.subr.bf16.mxu0 %v1238_v61 }
 0x13b   :  { %1209 = vmatpush3.bf16.msra.mxu1 %v1208_v62  ;;  %1241 = vmatpush3.bf16.msra.mxu0 %v1240_v1 }
 0x13c   :  { %1032 = vmatprep.subr.mxu1 %v1352_v7 }
 0x1f1   :  { %v407_v10 = vpop.f32.mrb[0].mxu1  ;;  %v478_v11 = vpop.f32.mrb[2].mxu0 }
 0x1f2   :  { %v408_v12 = vadd.f32 %v407_v10, %v324_v5  ;;  %v479_v13 = vadd.f32 %v478_v11, %v332_v6  ;;  %v409_v14 = vpop.f32.mrb[1].mxu1  ;;  %v480_v15 = vpop.f32.mrb[3].mxu0  ;;  %v839_v5 = vstv %s955_s22 }
 0x1f3   :  { %v410_v16 = vadd.f32 %v409_v14, %v328_v8  ;;  %v481_v17 = vadd.f32 %v480_v15, %v336_v9  ;;  %v836_v9 = vstv %s835_s23 }
 0x1f4   :  { %v483_v20 = vmax.f32 %v408_v12, 0.0  ;;  %v485_v21 = vmax.f32 %v479_v13, 0.0 }
 0x1f5   :  { %v484_v18 = vmax.f32 %v410_v16, 0.0  ;;  %v486_v19 = vmax.f32 %v481_v17, 0.0 }
 0x1f7   :  { %616 = vmatprep.mubr.f32.mxu1 %v484_v18  ;;  %686 = vmatprep.mubr.f32.mxu0 %v486_v19 }
 0x1f8   :  { %617 = vmatmul.mubr.f32.vlgmr.msra.gmra.mrb[2].mxu1 %v483_v20  ;;  %687 = vmatmul.mubr.f32.vlgmr.msra.gmra.mrb[4].mxu0 %v485_v21 }
 0x1f9   :  { %1033 = vmatpush3.msra.mxu1 %v752_v38  ;;  %1034 = vmatprep.mubr.msk.f32.mxu1 %vm1355_vm1, %v1352_v7 }
 0x1fa   :  { %1037 = vmatprep.subr.mxu1 %v1352_v7 }
 0x2cb   :  { %v990_v24 = vpop.f32.mrb[2].mxu1  ;;  %v1025_v25 = vpop.f32.mrb[4].mxu0 }
 0x2cc   :  { %v991_v22 = vpop.f32.mrb[3].mxu1  ;;  %v1026_v23 = vpop.f32.mrb[5].mxu0 }
 0x2cd   :  { %v992_v26 = vadd.f32 %v991_v22, %v990_v24  ;;  %v1027_v28 = vadd.f32 %v1026_v23, %v1025_v25 }
 0x2cf   :  { %v619_v29 = vadd.f32 %v992_v26, %v551_v27 }
 0x2d1   :  { %v689_v30 = vadd.f32 %v1027_v28, %v619_v29 }
 0x2d3   :  { %v692_v33 = vmax.f32 %v689_v30, 0.0 }
 0x2d5   :  { %v733_v34 = vmul.f32 %v732_v31, %v692_v33  ;;  %v725_v35 = vmul.f32 %v724_v32, %v692_v33  ;;  %v706_v39 = vmul.f32 %v705_v36, %v692_v33  ;;  %v698_v40 = vmul.f32 %v697_v37, %v692_v33 }
 0x2d6   :  { %v714_v43 = vmul.f32 %v713_v41, %v692_v33  ;;  %v741_v44 = vmul.f32 %v740_v42, %v692_v33  ;;  %v722_v49 = vmul.f32 %v721_v45, %v692_v33  ;;  %v695_v51 = vmul.f32 %v694_v48, %v692_v33 }
 0x2d7   :  { %735 = vrot.lane.b32.xlu1 %v733_v34, %s1353_s6  ;;  %727 = vrot.lane.b32.xlu0 %v725_v35, %s1354_s17 }
 0x2db   :  { %708 = vrot.lane.b32.xlu1 %v706_v39, %s1353_s6  ;;  %700 = vrot.lane.b32.xlu0 %v698_v40, %s1354_s17 }
 0x2df   :  { %716 = vrot.lane.b32.xlu1 %v714_v43, %s1356_s7  ;;  %743 = vrot.lane.b32.xlu0 %v741_v44, %s1356_s7 }
 0x349   :  { %v736_v46 = vpop.permute.xlu1 %735  ;;  %v728_v47 = vpop.permute.xlu0 %727 }
 0x34a   :  { %v730_v50 = vadd.f32 %v728_v47, %v722_v49 }
 0x34c   :  { %v738_v56 = vadd.f32 %v736_v46, %v730_v50 }
 0x34d   :  { %v709_v52 = vpop.permute.xlu1 %708  ;;  %v701_v53 = vpop.permute.xlu0 %700 }
 0x34e   :  { %v703_v54 = vadd.f32 %v701_v53, %v695_v51 }
 0x350   :  { %v711_v55 = vadd.f32 %v709_v52, %v703_v54 }
 0x351   :  { %v717_v57 = vpop.permute.xlu1 %716  ;;  %v744_v58 = vpop.permute.xlu0 %743 }
 0x352   :  { %v746_v59 = vadd.f32 %v744_v58, %v738_v56  ;;  %v719_v60 = vadd.f32 %v717_v57, %v711_v55 }
 0x354   :  { %v748_v61 = vrot.slane %v746_v59, 7 }
 0x356   :  { %v751_v62 = vsel %vm750_vm2, %v719_v60, %v748_v61 }
 0x357   :  { %1035 = vmatmul.mubr.msk.f32.vlgmr.msra.gmra.mrb[4].mxu1 %vm753_vm3, %v751_v62 }
 0x358   :  { %1038 = vmatpush3.msra.mxu1 %v752_v38  ;;  %1039 = vmatprep.mubr.msk.f32.mxu1 %vm1355_vm1, %v1352_v7  ;;  %v846_v7 = vstv %s1724_s11 }
 0x42a   :  { %v823_v1 = vpop.f32.mrb[4].mxu1 }
 0x42b   :  { %v829_v2 = vadd.f32 %v828_v63, %v823_v1  ;;  %v833_v3 = vadd.f32 %v832_v0, %v823_v1  ;;  %v1036_v4 = vpop.f32.mrb[5].mxu1 }
 0x42d   :  { %v830_v6 = vmax.f32 %v829_v2, 0.0  ;;  %v834_v8 = vmax.f32 %v833_v3, 0.0 }
 0x42f   :  { %v840_v10 = vmul.f32 %v839_v5, %v834_v8  ;;  %v837_v11 = vmul.f32 %v836_v9, %v830_v6 }
 0x431   :  { %v842_v12 = vrot.slane %v840_v10, 1 }
 0x433   :  { %v844_v13 = vadd.f32 %v842_v12, %v837_v11 }
 0x435   :  { %1040 = vmatmul.mubr.msk.f32.vlgmr.msra.gmra.mrb[6].mxu1 %vm753_vm3, %v844_v13 }
 0x508   :  { %v916_v14 = vpop.f32.mrb[6].mxu1 }
 0x509   :  { %v917_v15 = vadd.f32 %v916_v14, %v846_v7  ;;  %v1041_v16 = vpop.f32.mrb[7].mxu1 }
 0x50b   :  { %v957_v17 = vmul.f32 -1.442695, %v917_v15 }
 0x50d   :  { %1254 = vpow2.f32 %v957_v17 }
 0x517   :  { %v1255_v18 = vpop.eup %1254 }
 0x518   :  { %v923_v19 = vadd.f32 1.0, %v1255_v18 }
 0x51a   :  { %1256 = vrcp.f32 %v923_v19 }
 0x524   :  { %v1257_v20 = vpop.eup %1256 }
 0x525   :  { %927 = vst.msk [vmem:[#allocation11] sm:$0x1] %vm926_vm4, %v1257_v20 }
 0x526   :  { %1327 = shalt.err (!%p1324_p13)
}
 0x527   :  { %s1328_s3 = scalar_lea.hbm %s1725_s12, 16 }
 0x528   :  { %p1329_p0 = scmp.ne.s32.totalorder %s1725_s12, %s1328_s3  ;;  %p1332_p1 = scmp.lt.u32.totalorder %s1328_s3, %s1725_s12 }
 0x52a   :  { %p1334_p2 = pnand %p1332_p1, %p1329_p0 }
 0x52c   :  { %1337 = shalt.err (!%p1334_p2)
}
 0x52d   :  { %937 = dma.vmem_to_hbm [thread:$0]  %s935_s0, 16, %s1725_s12, [#allocation5]  }
 0x52e   :  { %1344 = dma.done.wait [#allocation5], 16  }
 0x52f   :  { %1345 = vsyncadd [#allocation5], 4294967280 }
 0x530   :  { %941 = vsyncpa [#allocation4], 1 }
 0x531   :  { %942 = vsyncpa [#allocation5], 1 }
 0x532   :  { %943 = vsyncpa [#allocation6], 1 }
 0x533   :  { %944 = vsyncpa [#allocation9], 1 }

</bundles_post_ra>
